<compile_context>
chip_gen: v5e
topology: v5e:2x2
jax: 0.10.0
libtpu: 0.0.40
codegen_flags: <defaults>
</compile_context>

<pallas_src>
import functools

import jax
import jax.numpy as jnp
from jax import lax
from jax.experimental import pallas as pl
from jax.experimental.pallas import tpu as pltpu


def _cdiv(a, b):
    return -(-a // b)


def _round_up(a, m):
    return _cdiv(a, m) * m


def critic_kernel(x_ref, w1_ref, b1_ref, w2_ref, b2_ref, w3_ref, b3_ref, o_ref):
    # x_ref : (TILE_B, N_IN) f32  -- native batch-major layout, streamed.
    # w1    : (H, N_IN)  w2: (H, H)  w3: (1, H)   (f32, VMEM-resident)
    # b1,b2 : (H, 1)     b3: (1, 1)
    # o_ref : (1, TILE_B) f32  -- lane-dense output slab.
    x = x_ref[...]

    # fc1 + ReLU: contract on x's last (feature) dim -> feature-major (H, TILE_B).
    # dot_general with rhs contracting dim = 1 (i.e. w1 @ x.T on the MXU).
    h1 = lax.dot_general(w1_ref[...], x, (((1,), (1,)), ((), ())),
                         preferred_element_type=jnp.float32)
    h1 = jnp.maximum(h1 + b1_ref[...], 0.0)

    # fc2 + ReLU
    h2 = jnp.dot(w2_ref[...], h1, preferred_element_type=jnp.float32)
    h2 = jnp.maximum(h2 + b2_ref[...], 0.0)

    # state_value head -> (1, TILE_B), lane-dense.
    v = jnp.dot(w3_ref[...], h2, preferred_element_type=jnp.float32)
    o_ref[...] = (v + b3_ref[...]).astype(o_ref.dtype)


def critic_forward(x, params, *, max_tile_b=8192):
    """x: (B, n_in) float array. params: PyTorch-layout (out,in) weights + (out,) biases."""
    w1, b1 = params["fc1"]            # (10, n_in), (10,)
    w2, b2 = params["fc2"]            # (10, 10),   (10,)
    w3, b3 = params["state_value"]    # (1, 10),    (1,)

    B, n_in = x.shape
    h = _round_up(w1.shape[0], 8)     # 10 -> 16 (sublane-friendly hidden dim)

    # Batch tiling: multiples of 128 lanes.  Large tiles amortize the ~0.35us
    # per-grid-step overhead; when B spans >= 2 lane-chunks keep >= 2 grid
    # steps so the "parallel" axis distributes across both TCs on v7x.
    n128 = max(_cdiv(B, 128), 1)
    max_chunks = max(max_tile_b // 128, 1)
    chunks = min(max_chunks, max(_cdiv(n128, 2), 1)) if n128 >= 2 else 1
    tile_b = chunks * 128
    n_steps = _cdiv(n128, chunks)
    b_pad = n_steps * tile_b

    # x stays in its native layout / dtype (f32).  Only pad the batch dim (a
    # cheap contiguous copy, elided when B is already tile-aligned); the
    # feature (contraction) dim is NOT padded -- it is the dominant HBM stream.
    x = x.astype(jnp.float32)
    if b_pad != B:
        x = jnp.pad(x, ((0, b_pad - B), (0, 0)))

    # Tiny resident weights: pad only the hidden (out-feature) dim to 16.
    f32 = jnp.float32
    w1p = jnp.zeros((h, n_in), f32).at[:w1.shape[0], :].set(w1.astype(f32))
    b1p = jnp.zeros((h, 1), f32).at[:b1.shape[0], 0].set(b1.astype(f32))
    w2p = jnp.zeros((h, h), f32).at[:w2.shape[0], :w2.shape[1]].set(w2.astype(f32))
    b2p = jnp.zeros((h, 1), f32).at[:b2.shape[0], 0].set(b2.astype(f32))
    w3p = jnp.zeros((1, h), f32).at[:, :w3.shape[1]].set(w3.astype(f32))
    b3p = b3.reshape(1, 1).astype(f32)

    cost = pl.CostEstimate(
        flops=2 * b_pad * (h * n_in + h * h + h),
        transcendentals=0,
        bytes_accessed=4 * b_pad * n_in + 4 * b_pad
                       + 4 * (h * n_in + h * h + 3 * h + 1),
    )

    out = pl.pallas_call(
        critic_kernel,
        out_shape=jax.ShapeDtypeStruct((1, b_pad), jnp.float32),
        grid_spec=pltpu.PrefetchScalarGridSpec(
            num_scalar_prefetch=0,
            grid=(n_steps,),
            in_specs=[
                pl.BlockSpec((tile_b, n_in), lambda i: (i, 0)),  # x: streamed, native
                pl.BlockSpec((h, n_in), lambda i: (0, 0)),       # w1: resident
                pl.BlockSpec((h, 1), lambda i: (0, 0)),          # b1
                pl.BlockSpec((h, h), lambda i: (0, 0)),          # w2
                pl.BlockSpec((h, 1), lambda i: (0, 0)),          # b2
                pl.BlockSpec((1, h), lambda i: (0, 0)),          # w3
                pl.BlockSpec((1, 1), lambda i: (0, 0)),          # b3
            ],
            out_specs=pl.BlockSpec((1, tile_b), lambda i: (0, i)),
        ),
        compiler_params=pltpu.CompilerParams(
            dimension_semantics=("parallel",)),
        cost_estimate=cost,
    )(x, w1p, b1p, w2p, b2p, w3p, b3p)

    # (1, b_pad) lane-dense slab -> (B, 1) like PyTorch.
    return out[0, :B].reshape(B, 1)


def init_params(key, n_in):
    """PyTorch nn.Linear default init: U(-1/sqrt(fan_in), 1/sqrt(fan_in)); (out, in) weights."""
    def linear(k, fan_in, fan_out):
        kw, kb = jax.random.split(k)
        bound = 1.0 / jnp.sqrt(fan_in)
        w = jax.random.uniform(kw, (fan_out, fan_in), jnp.float32, -bound, bound)
        b = jax.random.uniform(kb, (fan_out,), jnp.float32, -bound, bound)
        return w, b

    k1, k2, k3 = jax.random.split(key, 3)
    return {
        "fc1": linear(k1, n_in, 10),
        "fc2": linear(k2, 10, 10),
        "state_value": linear(k3, 10, 1),
    }


def critic_reference_f32(x, params):
    """Pure f32 PyTorch semantics (high-precision matmuls)."""
    hp = jax.lax.Precision.HIGHEST
    w1, b1 = params["fc1"]
    w2, b2 = params["fc2"]
    w3, b3 = params["state_value"]
    h1 = jnp.maximum(jnp.dot(x, w1.T, precision=hp) + b1, 0.0)
    h2 = jnp.maximum(jnp.dot(h1, w2.T, precision=hp) + b2, 0.0)
    return jnp.dot(h2, w3.T, precision=hp) + b3


if __name__ == "__main__":
    key = jax.random.PRNGKey(0)
    kx, kp = jax.random.split(key)

    batch = 8
    number_of_inputs = 12  # observation dim for the crazyflie RL agent
    x = jax.random.normal(kx, (batch, number_of_inputs), jnp.float32)
    params = init_params(kp, number_of_inputs)

    fwd = jax.jit(functools.partial(critic_forward, max_tile_b=8192))
    value = jax.block_until_ready(fwd(x, params))

    assert value.shape == (batch, 1)
    ref = critic_reference_f32(x, params)
    assert jnp.allclose(value, ref, atol=2e-3, rtol=2e-3), (
        f"max abs err = {jnp.max(jnp.abs(value - ref))}")
    print("KERNEL_OK")
</pallas_src>

<mosaic_0001>
module attributes {stable_mosaic.version = 11 : i64} {
  func.func @critic_kernel(%arg0: i32, %arg1: memref<128x12xf32, #tpu.memory_space<vmem>>, %arg2: memref<16x12xf32, #tpu.memory_space<vmem>>, %arg3: memref<16x1xf32, #tpu.memory_space<vmem>>, %arg4: memref<16x16xf32, #tpu.memory_space<vmem>>, %arg5: memref<16x1xf32, #tpu.memory_space<vmem>>, %arg6: memref<1x16xf32, #tpu.memory_space<vmem>>, %arg7: memref<1x1xf32, #tpu.memory_space<vmem>>, %arg8: memref<1x128xf32, #tpu.memory_space<vmem>>) attributes {dimension_semantics = [#tpu.dimension_semantics<parallel>], iteration_bounds = array<i64: 1>, scalar_prefetch = 0 : i64, scratch_operands = 0 : i64, tpu.core_type = #tpu.core_type<tc>, window_params = [{transform_indices = @transform_0, window_bounds = array<i64: 128, 12>}, {pipeline_mode = #tpu.pipeline_mode<synchronous>, transform_indices = @transform_1, window_bounds = array<i64: 16, 12>}, {pipeline_mode = #tpu.pipeline_mode<synchronous>, transform_indices = @transform_2, window_bounds = array<i64: 16, 1>}, {pipeline_mode = #tpu.pipeline_mode<synchronous>, transform_indices = @transform_3, window_bounds = array<i64: 16, 16>}, {pipeline_mode = #tpu.pipeline_mode<synchronous>, transform_indices = @transform_4, window_bounds = array<i64: 16, 1>}, {pipeline_mode = #tpu.pipeline_mode<synchronous>, transform_indices = @transform_5, window_bounds = array<i64: 1, 16>}, {pipeline_mode = #tpu.pipeline_mode<synchronous>, transform_indices = @transform_6, window_bounds = array<i64: 1, 1>}, {transform_indices = @transform_7, window_bounds = array<i64: 1, 128>}]} {
    %c0 = arith.constant 0 : index
    %c0_0 = arith.constant 0 : index
    %0 = vector.load %arg1[%c0, %c0_0] : memref<128x12xf32, #tpu.memory_space<vmem>>, vector<128x12xf32>
    %c0_1 = arith.constant 0 : index
    %c0_2 = arith.constant 0 : index
    %1 = vector.load %arg2[%c0_1, %c0_2] : memref<16x12xf32, #tpu.memory_space<vmem>>, vector<16x12xf32>
    %cst = arith.constant dense<0.000000e+00> : vector<16x128xf32>
    %2 = tpu.matmul %1, %0, %cst {dimension_numbers = #tpu.dot_dimension_numbers<[1], [1], [0], [0], [0, 0, 1, 0], [], []>} : vector<16x12xf32>, vector<128x12xf32>, vector<16x128xf32> -> vector<16x128xf32>
    %c0_3 = arith.constant 0 : index
    %c0_4 = arith.constant 0 : index
    %3 = vector.load %arg3[%c0_3, %c0_4] : memref<16x1xf32, #tpu.memory_space<vmem>>, vector<16x1xf32>
    %4 = vector.broadcast %3 : vector<16x1xf32> to vector<16x128xf32>
    %5 = arith.addf %2, %4 : vector<16x128xf32>
    %cst_5 = arith.constant 0.000000e+00 : f32
    %6 = vector.broadcast %cst_5 : f32 to vector<16x128xf32>
    %7 = arith.maximumf %5, %6 : vector<16x128xf32>
    %c0_6 = arith.constant 0 : index
    %c0_7 = arith.constant 0 : index
    %8 = vector.load %arg4[%c0_6, %c0_7] : memref<16x16xf32, #tpu.memory_space<vmem>>, vector<16x16xf32>
    %cst_8 = arith.constant dense<0.000000e+00> : vector<16x128xf32>
    %9 = tpu.matmul %8, %7, %cst_8 {dimension_numbers = #tpu.dot_dimension_numbers<[1], [0], [0], [1], [0, 0, 1, 1], [], []>} : vector<16x16xf32>, vector<16x128xf32>, vector<16x128xf32> -> vector<16x128xf32>
    %c0_9 = arith.constant 0 : index
    %c0_10 = arith.constant 0 : index
    %10 = vector.load %arg5[%c0_9, %c0_10] : memref<16x1xf32, #tpu.memory_space<vmem>>, vector<16x1xf32>
    %11 = vector.broadcast %10 : vector<16x1xf32> to vector<16x128xf32>
    %12 = arith.addf %9, %11 : vector<16x128xf32>
    %cst_11 = arith.constant 0.000000e+00 : f32
    %13 = vector.broadcast %cst_11 : f32 to vector<16x128xf32>
    %14 = arith.maximumf %12, %13 : vector<16x128xf32>
    %c0_12 = arith.constant 0 : index
    %c0_13 = arith.constant 0 : index
    %15 = vector.load %arg6[%c0_12, %c0_13] : memref<1x16xf32, #tpu.memory_space<vmem>>, vector<1x16xf32>
    %cst_14 = arith.constant dense<0.000000e+00> : vector<1x128xf32>
    %16 = tpu.matmul %15, %14, %cst_14 {dimension_numbers = #tpu.dot_dimension_numbers<[1], [0], [0], [1], [0, 0, 1, 1], [], []>} : vector<1x16xf32>, vector<16x128xf32>, vector<1x128xf32> -> vector<1x128xf32>
    %c0_15 = arith.constant 0 : index
    %c0_16 = arith.constant 0 : index
    %17 = vector.load %arg7[%c0_15, %c0_16] : memref<1x1xf32, #tpu.memory_space<vmem>>, vector<1x1xf32>
    %18 = vector.broadcast %17 : vector<1x1xf32> to vector<1x128xf32>
    %19 = arith.addf %16, %18 : vector<1x128xf32>
    %c0_17 = arith.constant 0 : index
    %c0_18 = arith.constant 0 : index
    %20 = vector.load %arg8[%c0_17, %c0_18] : memref<1x128xf32, #tpu.memory_space<vmem>>, vector<1x128xf32>
    tpu.vector_store %arg8[%c0_17, %c0_18], %19 {strides = array<i32>} : memref<1x128xf32, #tpu.memory_space<vmem>>, vector<1x128xf32>,
    return
  }
  func.func @transform_0(%arg0: i32) -> (i32, i32) {
    %c0_i32 = arith.constant 0 : i32
    %c0_i32_0 = arith.constant 0 : i32
    return %arg0, %c0_i32 : i32, i32
  }
  func.func @transform_1(%arg0: i32) -> (i32, i32) {
    %c0_i32 = arith.constant 0 : i32
    %c0_i32_0 = arith.constant 0 : i32
    %c0_i32_1 = arith.constant 0 : i32
    return %c0_i32, %c0_i32_0 : i32, i32
  }
  func.func @transform_2(%arg0: i32) -> (i32, i32) {
    %c0_i32 = arith.constant 0 : i32
    %c0_i32_0 = arith.constant 0 : i32
    %c0_i32_1 = arith.constant 0 : i32
    return %c0_i32, %c0_i32_0 : i32, i32
  }
  func.func @transform_3(%arg0: i32) -> (i32, i32) {
    %c0_i32 = arith.constant 0 : i32
    %c0_i32_0 = arith.constant 0 : i32
    %c0_i32_1 = arith.constant 0 : i32
    return %c0_i32, %c0_i32_0 : i32, i32
  }
  func.func @transform_4(%arg0: i32) -> (i32, i32) {
    %c0_i32 = arith.constant 0 : i32
    %c0_i32_0 = arith.constant 0 : i32
    %c0_i32_1 = arith.constant 0 : i32
    return %c0_i32, %c0_i32_0 : i32, i32
  }
  func.func @transform_5(%arg0: i32) -> (i32, i32) {
    %c0_i32 = arith.constant 0 : i32
    %c0_i32_0 = arith.constant 0 : i32
    %c0_i32_1 = arith.constant 0 : i32
    return %c0_i32, %c0_i32_0 : i32, i32
  }
  func.func @transform_6(%arg0: i32) -> (i32, i32) {
    %c0_i32 = arith.constant 0 : i32
    %c0_i32_0 = arith.constant 0 : i32
    %c0_i32_1 = arith.constant 0 : i32
    return %c0_i32, %c0_i32_0 : i32, i32
  }
  func.func @transform_7(%arg0: i32) -> (i32, i32) {
    %c0_i32 = arith.constant 0 : i32
    %c0_i32_0 = arith.constant 0 : i32
    return %c0_i32, %arg0 : i32, i32
  }
}

</mosaic_0001>

<bundles_post_ra>
// kernel: critic_forward.1
= control target key start
LH: loop header
LB: loop body
LE: loop exit
PB: predicated region body
PF: predicated region fallthrough
CT: control target
= control target key end

     0   :  { %vm58_vm0 = vcmask 97280   ;;  %v261_v11 = vmov 0   ;;  %vm152_vm1 = vcmask 130048   ;;  %s420_s0 = inlined_call_operand.vmem [shape: f32[128,12], index: 0, kind: input, shape index: {}]   ;;  %s421_s2 = inlined_call_operand.vmem [shape: f32[16,1], index: 2, kind: input, shape index: {}]   ;;  %s422_s1 = inlined_call_operand.vmem [shape: f32[16,12], index: 1, kind: input, shape index: {}]   ;;  %s423_s4 = inlined_call_operand.vmem [shape: f32[16,1], index: 4, kind: input, shape index: {}]   ;;  %s424_s3 = inlined_call_operand.vmem [shape: f32[16,16], index: 3, kind: input, shape index: {}]   ;;  %s425_s6 = inlined_call_operand.<no memory space> [shape: f32[1,1], index: 6, kind: input, shape index: {}]   ;;  %s426_s5 = inlined_call_operand.vmem [shape: f32[1,16], index: 5, kind: input, shape index: {}]   ;;  %s427_s7 = inlined_call_operand.vmem [shape: f32[1,128], index: 7, kind: output, shape index: {}]  }
   0x1   :  { %v43_v0 = vld [vmem:[%s420_s0 + $0x78] sm:$0xff]  ;;  %v42_v1 = vld [vmem:[%s420_s0 + $0x70] sm:$0xff]  ;;  %v41_v2 = vld [vmem:[%s420_s0 + $0x68] sm:$0xff]  ;;  %258 = vset.pattern.permute.xlu0 %v261_v11  ;;  %259 = vset.pattern.permute.xlu1 %v261_v11  ;;  %v12_v33 = vstv %s425_s6 }
   0x2   :  { %220 = vmatpush.xpose.msk.msra.mxu0 %vm58_vm0, %v43_v0  ;;  %241 = vmatpush.xpose.msk.msra.mxu3 %vm58_vm0, %v43_v0  ;;  %v40_v3 = vld [vmem:[%s420_s0 + $0x60] sm:$0xff]  ;;  %v39_v4 = vld [vmem:[%s420_s0 + $0x58] sm:$0xff]  ;;  %v38_v5 = vld [vmem:[%s420_s0 + $0x50] sm:$0xff]  ;;  %13 = vst [vmem:[#allocation2] sm:$0x1] %v12_v33 }
   0x3   :  { %v37_v6 = vld [vmem:[%s420_s0 + $0x48] sm:$0xff]  ;;  %v36_v7 = vld [vmem:[%s420_s0 + $0x40] sm:$0xff]  ;;  %v35_v8 = vld [vmem:[%s420_s0 + $0x38] sm:$0xff]  ;;  %260 = vset.pattern.permute.xlu2 %v261_v11 }
   0x4   :  { %v47_v9 = vld [vmem:[%s421_s2 + $0x8] sm:$0xff]  ;;  %v34_v10 = vld [vmem:[%s420_s0 + $0x30] sm:$0xff]  ;;  %v46_v13 = vld [vmem:[%s421_s2] sm:$0xff] }
   0x5   :  { %55 = vperm.xlu0 %258, %v47_v9   ;;  %v33_v12 = vld [vmem:[%s420_s0 + $0x28] sm:$0xff]  ;;  %v32_v14 = vld [vmem:[%s420_s0 + $0x20] sm:$0xff]  ;;  %v31_v15 = vld [vmem:[%s420_s0 + $0x18] sm:$0xff] }
   0x6   :  { %221 = vmatpush.xpose.msk.msra.mxu0 %vm58_vm0, %v42_v1  ;;  %242 = vmatpush.xpose.msk.msra.mxu3 %vm58_vm0, %v42_v1  ;;  %v30_v16 = vld [vmem:[%s420_s0 + $0x10] sm:$0xff]  ;;  %v29_v17 = vld [vmem:[%s420_s0 + $0x8] sm:$0xff]  ;;  %v28_v18 = vld [vmem:[%s420_s0] sm:$0xff] }
   0x7   :  { %v44_v19 = vld [vmem:[%s422_s1] sm:$0xff]  ;;  %v45_v20 = vld [vmem:[%s422_s1 + $0x8] sm:$0xff] }
   0x8   :  { %v141_v21 = vld [vmem:[%s423_s4 + $0x8] sm:$0xff]  ;;  %v140_v22 = vld [vmem:[%s423_s4] sm:$0xff] }
   0x9   :  { %149 = vperm.xlu1 %259, %v141_v21   ;;  %v138_v31 = vld [vmem:[%s424_s3] sm:$0xff]  ;;  %v139_v32 = vld [vmem:[%s424_s3 + $0x8] sm:$0xff] }
   0xa   :  { %222 = vmatpush.xpose.msk.msra.mxu0 %vm58_vm0, %v41_v2  ;;  %243 = vmatpush.xpose.msk.msra.mxu3 %vm58_vm0, %v41_v2  ;;  %v185_v34 = vld [vmem:[#allocation2] sm:$0x1] }
   0xb   :  { %188 = vperm.xlu2 %260, %v185_v34   ;;  %v184_v43 = vld [vmem:[%s426_s5] sm:$0x1] }
   0xd   :  { %50 = vperm.xlu0 %258, %v46_v13  }
   0xe   :  { %223 = vmatpush.xpose.msk.msra.mxu0 %vm58_vm0, %v40_v3  ;;  %244 = vmatpush.xpose.msk.msra.mxu3 %vm58_vm0, %v40_v3 }
  0x11   :  { %144 = vperm.xlu1 %259, %v140_v22  }
  0x12   :  { %224 = vmatpush.xpose.msk.msra.mxu0 %vm58_vm0, %v39_v4  ;;  %245 = vmatpush.xpose.msk.msra.mxu3 %vm58_vm0, %v39_v4 }
  0x16   :  { %225 = vmatpush.xpose.msk.msra.mxu0 %vm58_vm0, %v38_v5  ;;  %246 = vmatpush.xpose.msk.msra.mxu3 %vm58_vm0, %v38_v5 }
  0x1a   :  { %226 = vmatpush.xpose.msk.msra.mxu0 %vm58_vm0, %v37_v6  ;;  %247 = vmatpush.xpose.msk.msra.mxu3 %vm58_vm0, %v37_v6 }
  0x1e   :  { %227 = vmatpush.xpose.msk.msra.mxu0 %vm58_vm0, %v36_v7  ;;  %248 = vmatpush.xpose.msk.msra.mxu3 %vm58_vm0, %v36_v7 }
  0x22   :  { %228 = vmatpush.xpose.msk.msra.mxu0 %vm58_vm0, %v35_v8  ;;  %249 = vmatpush.xpose.msk.msra.mxu3 %vm58_vm0, %v35_v8 }
  0x26   :  { %229 = vmatpush.xpose.msk.msra.mxu0 %vm58_vm0, %v34_v10  ;;  %250 = vmatpush.xpose.msk.msra.mxu3 %vm58_vm0, %v34_v10 }
  0x2a   :  { %230 = vmatpush.xpose.msk.msra.mxu0 %vm58_vm0, %v33_v12  ;;  %251 = vmatpush.xpose.msk.msra.mxu3 %vm58_vm0, %v33_v12 }
  0x2e   :  { %231 = vmatpush.xpose.msk.msra.mxu0 %vm58_vm0, %v32_v14  ;;  %252 = vmatpush.xpose.msk.msra.mxu3 %vm58_vm0, %v32_v14 }
  0x32   :  { %232 = vmatpush.xpose.msk.msra.mxu0 %vm58_vm0, %v31_v15  ;;  %253 = vmatpush.xpose.msk.msra.mxu3 %vm58_vm0, %v31_v15 }
  0x36   :  { %233 = vmatpush.xpose.msk.msra.mxu0 %vm58_vm0, %v30_v16  ;;  %254 = vmatpush.xpose.msk.msra.mxu3 %vm58_vm0, %v30_v16 }
  0x3a   :  { %234 = vmatpush.xpose.msk.msra.mxu0 %vm58_vm0, %v29_v17  ;;  %255 = vmatpush.xpose.msk.msra.mxu3 %vm58_vm0, %v29_v17 }
  0x3e   :  { %235 = vmatpush.xpose.msk.msra.mxu0 %vm58_vm0, %v28_v18  ;;  %256 = vmatpush.xpose.msk.msra.mxu3 %vm58_vm0, %v28_v18 }
  0x41   :  { %236 = vmatmul.msk.f32.vlgmr.msra.gmra.mxu0 %vm58_vm0, %v44_v19  ;;  %237 = vmatmul.msk.f32.vlgmr.msra.gmra.mxu3 %vm58_vm0, %v45_v20 }
  0x65   :  { %v189_v44 = vpop.permute.xlu2 %188 }
  0x66   :  { %v191_v45 = vperm.slane %v189_v44, 0 }
  0x77   :  { %v56_v23 = vpop.permute.xlu0 %55 }
  0x7b   :  { %v150_v35 = vpop.permute.xlu1 %149 }
  0x7f   :  { %v51_v24 = vpop.permute.xlu0 %50 }
  0x83   :  { %v145_v37 = vpop.permute.xlu1 %144 }
  0xbe   :  { %v130_v25 = vpop.f32.mrf.mxu0 }
  0xbf   :  { %v131_v27 = vadd.f32 %v130_v25, %v51_v24 }
  0xc1   :  { %v136_v30 = vmax.f32 %v131_v27, 0.0 }
  0xc4   :  { %v133_v26 = vpop.f32.mrf.mxu3 }
  0xc5   :  { %v134_v28 = vadd.f32 %v133_v26, %v56_v23 }
  0xc7   :  { %v137_v29 = vmax.f32 %v134_v28, 0.0 }
  0xc9   :  { %173 = vmatpush.msra.mxu1 %v137_v29 }
  0xcb   :  { %174 = vmatpush.msra.mxu1 %v136_v30 }
  0xcc   :  { %238 = vmatmul.msk.f32.vlgmr.msra.gmra.mxu1 %vm152_vm1, %v138_v31 }
  0xd4   :  { %239 = vmatmul.msk.f32.gmra.mxu1 %vm152_vm1, %v139_v32 }
 0x149   :  { %v176_v36 = vpop.f32.mrf.mxu1 }
 0x14a   :  { %v177_v39 = vadd.f32 %v176_v36, %v145_v37 }
 0x14c   :  { %v182_v42 = vmax.f32 %v177_v39, 0.0 }
 0x151   :  { %v179_v38 = vpop.f32.mrf.mxu1 }
 0x152   :  { %v180_v40 = vadd.f32 %v179_v38, %v150_v35 }
 0x154   :  { %v183_v41 = vmax.f32 %v180_v40, 0.0 }
 0x156   :  { %209 = vmatpush.msra.mxu2 %v183_v41 }
 0x158   :  { %210 = vmatpush.msra.mxu2 %v182_v42 }
 0x159   :  { %240 = vmatmul.msk.f32.vlgmr.msra.gmra.mxu2 %vm152_vm1, %v184_v43 }
 0x1dc   :  { %v212_v46 = vpop.f32.mrf.mxu2 }
 0x1dd   :  { %v213_v47 = vadd.f32 %v212_v46, %v191_v45 }
 0x1df   :  { %215 = vst [vmem:[%s427_s7] sm:$0x1] %v213_v47 }

</bundles_post_ra>
